<compile_context>
chip_gen: v7x
topology: tpu7x:2x2x1
jax: 0.10.0
libtpu: 0.0.40
codegen_flags: <defaults>
</compile_context>

<pallas_src>
import math

import jax
import jax.numpy as jnp
from jax import lax
from jax.experimental import pallas as pl
from jax.experimental.pallas import tpu as pltpu

_INV_SQRT2 = 1.0 / math.sqrt(2.0)


def _ffn_kernel(x_ref, w1_ref, w2_ref, o_ref, acc_ref):
    # x_ref:  (tm, dim)      activation row tile (input dtype)
    # w1_ref: (dim, th)      column tile of first weight (compute dtype)
    # w2_ref: (th, dim)      row tile of second weight (compute dtype)
    # o_ref:  (tm, dim)      output tile (resident across the hidden axis)
    # acc_ref:(tm, dim) f32  VMEM accumulator
    j = pl.program_id(1)

    @pl.when(j == 0)
    def _init():
        acc_ref[...] = jnp.zeros_like(acc_ref)

    # First projection on the MXU (bf16 x bf16 -> f32 accumulate).
    x = x_ref[...].astype(w1_ref.dtype)
    h = jnp.dot(x, w1_ref[...], preferred_element_type=jnp.float32)

    # Exact (erf-based) GELU, matching torch.nn.GELU() default.
    h = 0.5 * h * (1.0 + lax.erf(h * _INV_SQRT2))

    # Second projection: partial sum over this hidden tile.
    acc_ref[...] += jnp.dot(h.astype(w2_ref.dtype), w2_ref[...],
                            preferred_element_type=jnp.float32)

    @pl.when(j == pl.num_programs(1) - 1)
    def _finalize():
        o_ref[...] = acc_ref[...].astype(o_ref.dtype)


def _pick_hidden_tile(hidden, th):
    """Largest multiple of 128 <= th that divides hidden, else full hidden."""
    if hidden <= th:
        return hidden
    cand = (min(th, hidden) // 128) * 128
    while cand >= 128:
        if hidden % cand == 0:
            return cand
        cand -= 128
    return hidden


def feed_forward(x, w1, w2, mask=None, *, tm=256, th=512,
                 compute_dtype=jnp.bfloat16):
    """x: (B, N, dim); w1: (dim, hidden); w2: (hidden, dim).

    `mask` is accepted for API parity with the PyTorch module but unused.
    """
    del mask
    B, N, dim = x.shape
    hidden = w1.shape[1]
    assert w1.shape == (dim, hidden)
    assert w2.shape == (hidden, dim)

    M = B * N
    x2d = x.reshape(M, dim)

    # Cast weights once in the wrapper (not per grid step in the kernel).
    w1c = w1.astype(compute_dtype)
    w2c = w2.astype(compute_dtype)

    # Row tile: cap to the data; keep it a multiple of 8 when actually tiling.
    tm_eff = min(tm, M)
    if tm_eff < M and tm_eff % 8 != 0:
        tm_eff = max(8, (tm_eff // 8) * 8)

    # Hidden tile: must divide hidden exactly (accumulator correctness).
    th_eff = _pick_hidden_tile(hidden, th)

    grid = (pl.cdiv(M, tm_eff), hidden // th_eff)

    out2d = pl.pallas_call(
        _ffn_kernel,
        out_shape=jax.ShapeDtypeStruct((M, dim), x.dtype),
        grid_spec=pltpu.PrefetchScalarGridSpec(
            num_scalar_prefetch=0,
            grid=grid,
            in_specs=[
                pl.BlockSpec((tm_eff, dim), lambda i, j: (i, 0)),   # x rows
                pl.BlockSpec((dim, th_eff), lambda i, j: (0, j)),   # w1 cols
                pl.BlockSpec((th_eff, dim), lambda i, j: (j, 0)),   # w2 rows
            ],
            out_specs=pl.BlockSpec((tm_eff, dim), lambda i, j: (i, 0)),
            scratch_shapes=[pltpu.VMEM((tm_eff, dim), jnp.float32)],
        ),
        compiler_params=pltpu.CompilerParams(
            dimension_semantics=("parallel", "arbitrary"),
            vmem_limit_bytes=48 * 1024 * 1024,
        ),
    )(x2d, w1c, w2c)

    return out2d.reshape(B, N, dim)


def _reference(x, w1, w2):
    h = jnp.einsum("bnd,dh->bnh", x, w1)
    h = 0.5 * h * (1.0 + lax.erf(h / jnp.sqrt(2.0)))
    return jnp.einsum("bnh,hd->bnd", h, w2)


if __name__ == "__main__":
    # Small shapes consistent with the module: (batch, seq, dim), hidden = 2*dim.
    B, N, dim, hidden = 2, 8, 32, 64

    key = jax.random.PRNGKey(0)
    kx, k1, k2 = jax.random.split(key, 3)

    x = jax.random.normal(kx, (B, N, dim), dtype=jnp.float32)
    # Deterministic weight init (Kaiming-uniform-like scale, as nn.Linear).
    w1 = jax.random.uniform(k1, (dim, hidden), dtype=jnp.float32,
                            minval=-1.0, maxval=1.0) / math.sqrt(dim)
    w2 = jax.random.uniform(k2, (hidden, dim), dtype=jnp.float32,
                            minval=-1.0, maxval=1.0) / math.sqrt(hidden)

    mask = jnp.ones((B, N), dtype=jnp.float32)  # unused, parity with forward(x, mask)

    out = feed_forward(x, w1, w2, mask)
    out = jax.block_until_ready(out)

    ref = _reference(x, w1, w2)
    assert out.shape == (B, N, dim)
    # bf16 MXU inputs with f32 accumulation -> loosen tolerance vs f32 reference.
    assert jnp.allclose(out, ref, atol=3e-2, rtol=3e-2), "mismatch vs reference"

    print("KERNEL_OK")
</pallas_src>

<mosaic_0001>
module attributes {stable_mosaic.version = 11 : i64} {
  func.func @_ffn_kernel(%arg0: i32, %arg1: i32, %arg2: memref<16x32xf32, #tpu.memory_space<vmem>>, %arg3: memref<32x64xbf16, #tpu.memory_space<vmem>>, %arg4: memref<64x32xbf16, #tpu.memory_space<vmem>>, %arg5: memref<16x32xf32, #tpu.memory_space<vmem>>, %arg6: memref<16x32xf32, #tpu.memory_space<vmem>>) attributes {dimension_semantics = [#tpu.dimension_semantics<parallel>, #tpu.dimension_semantics<arbitrary>], iteration_bounds = array<i64: 1, 1>, scalar_prefetch = 0 : i64, scratch_operands = 1 : i64, tpu.core_type = #tpu.core_type<tc>, window_params = [{transform_indices = @transform_0, window_bounds = array<i64: 16, 32>}, {transform_indices = @transform_1, window_bounds = array<i64: 32, 64>}, {transform_indices = @transform_2, window_bounds = array<i64: 64, 32>}, {transform_indices = @transform_3, window_bounds = array<i64: 16, 32>}]} {
    %c0_i32 = arith.constant 0 : i32
    %0 = arith.cmpi eq, %arg1, %c0_i32 : i32
    %1 = arith.extui %0 : i1 to i32
    %c0_i32_0 = arith.constant 0 : i32
    %2 = arith.cmpi ne, %1, %c0_i32_0 : i32
    scf.if %2 {
      %cst_16 = arith.constant 0.000000e+00 : f32
      %24 = vector.broadcast %cst_16 : f32 to vector<16x32xf32>
      %c0_17 = arith.constant 0 : index
      %c0_18 = arith.constant 0 : index
      %25 = vector.load %arg6[%c0_17, %c0_18] : memref<16x32xf32, #tpu.memory_space<vmem>>, vector<16x32xf32>
      tpu.vector_store %arg6[%c0_17, %c0_18], %24 {strides = array<i32>} : memref<16x32xf32, #tpu.memory_space<vmem>>, vector<16x32xf32>,
    } else {
    }
    %c0 = arith.constant 0 : index
    %c0_1 = arith.constant 0 : index
    %3 = vector.load %arg2[%c0, %c0_1] : memref<16x32xf32, #tpu.memory_space<vmem>>, vector<16x32xf32>
    %4 = arith.truncf %3 : vector<16x32xf32> to vector<16x32xbf16>
    %c0_2 = arith.constant 0 : index
    %c0_3 = arith.constant 0 : index
    %5 = vector.load %arg3[%c0_2, %c0_3] : memref<32x64xbf16, #tpu.memory_space<vmem>>, vector<32x64xbf16>
    %cst = arith.constant dense<0.000000e+00> : vector<16x64xf32>
    %6 = tpu.matmul %4, %5, %cst {dimension_numbers = #tpu.dot_dimension_numbers<[1], [0], [0], [1], [0, 0, 1, 1], [], []>} : vector<16x32xbf16>, vector<32x64xbf16>, vector<16x64xf32> -> vector<16x64xf32>
    %cst_4 = arith.constant 5.000000e-01 : f32
    %7 = vector.broadcast %cst_4 : f32 to vector<16x64xf32>
    %8 = arith.mulf %7, %6 : vector<16x64xf32>
    %cst_5 = arith.constant 0.707106769 : f32
    %9 = vector.broadcast %cst_5 : f32 to vector<16x64xf32>
    %10 = arith.mulf %6, %9 : vector<16x64xf32>
    %11 = math.erf %10 : vector<16x64xf32>
    %cst_6 = arith.constant 1.000000e+00 : f32
    %12 = vector.broadcast %cst_6 : f32 to vector<16x64xf32>
    %13 = arith.addf %12, %11 : vector<16x64xf32>
    %14 = arith.mulf %8, %13 : vector<16x64xf32>
    %c0_7 = arith.constant 0 : index
    %c0_8 = arith.constant 0 : index
    %15 = vector.load %arg6[%c0_7, %c0_8] : memref<16x32xf32, #tpu.memory_space<vmem>>, vector<16x32xf32>
    %16 = arith.truncf %14 : vector<16x64xf32> to vector<16x64xbf16>
    %c0_9 = arith.constant 0 : index
    %c0_10 = arith.constant 0 : index
    %17 = vector.load %arg4[%c0_9, %c0_10] : memref<64x32xbf16, #tpu.memory_space<vmem>>, vector<64x32xbf16>
    %cst_11 = arith.constant dense<0.000000e+00> : vector<16x32xf32>
    %18 = tpu.matmul %16, %17, %cst_11 {dimension_numbers = #tpu.dot_dimension_numbers<[1], [0], [0], [1], [0, 0, 1, 1], [], []>} : vector<16x64xbf16>, vector<64x32xbf16>, vector<16x32xf32> -> vector<16x32xf32>
    %19 = arith.addf %15, %18 : vector<16x32xf32>
    %c0_12 = arith.constant 0 : index
    %c0_13 = arith.constant 0 : index
    %20 = vector.load %arg6[%c0_12, %c0_13] : memref<16x32xf32, #tpu.memory_space<vmem>>, vector<16x32xf32>
    tpu.vector_store %arg6[%c0_12, %c0_13], %19 {strides = array<i32>} : memref<16x32xf32, #tpu.memory_space<vmem>>, vector<16x32xf32>,
    %c0_i32_14 = arith.constant 0 : i32
    %21 = arith.cmpi eq, %arg1, %c0_i32_14 : i32
    %22 = arith.extui %21 : i1 to i32
    %c0_i32_15 = arith.constant 0 : i32
    %23 = arith.cmpi ne, %22, %c0_i32_15 : i32
    scf.if %23 {
      %c0_16 = arith.constant 0 : index
      %c0_17 = arith.constant 0 : index
      %24 = vector.load %arg6[%c0_16, %c0_17] : memref<16x32xf32, #tpu.memory_space<vmem>>, vector<16x32xf32>
      %c0_18 = arith.constant 0 : index
      %c0_19 = arith.constant 0 : index
      %25 = vector.load %arg5[%c0_18, %c0_19] : memref<16x32xf32, #tpu.memory_space<vmem>>, vector<16x32xf32>
      tpu.vector_store %arg5[%c0_18, %c0_19], %24 {strides = array<i32>} : memref<16x32xf32, #tpu.memory_space<vmem>>, vector<16x32xf32>,
    } else {
    }
    return
  }
  func.func @transform_0(%arg0: i32, %arg1: i32) -> (i32, i32) {
    %c0_i32 = arith.constant 0 : i32
    %c0_i32_0 = arith.constant 0 : i32
    return %arg0, %c0_i32 : i32, i32
  }
  func.func @transform_1(%arg0: i32, %arg1: i32) -> (i32, i32) {
    %c0_i32 = arith.constant 0 : i32
    %c0_i32_0 = arith.constant 0 : i32
    return %c0_i32, %arg1 : i32, i32
  }
  func.func @transform_2(%arg0: i32, %arg1: i32) -> (i32, i32) {
    %c0_i32 = arith.constant 0 : i32
    %c0_i32_0 = arith.constant 0 : i32
    return %arg1, %c0_i32 : i32, i32
  }
  func.func @transform_3(%arg0: i32, %arg1: i32) -> (i32, i32) {
    %c0_i32 = arith.constant 0 : i32
    %c0_i32_0 = arith.constant 0 : i32
    return %arg0, %c0_i32 : i32, i32
  }
}

</mosaic_0001>

<bundles_post_ra>
// kernel: tpu_custom_call.1
= control target key start
LH: loop header
LB: loop body
LE: loop exit
PB: predicated region body
PF: predicated region fallthrough
CT: control target
= control target key end

     0   :  { %v279_v1 = vmov 0.0   ;;  %vm280_vm0 = vmmov 0   ;;  %vm20_vm1 = vcmask 261120   ;;  %s347_s0 = inlined_call_operand.vmem [shape: f32[16,32], index: 0, kind: input, shape index: {}]   ;;  %s348_s1 = inlined_call_operand.vmem [shape: bf16[32,64], index: 1, kind: input, shape index: {}]   ;;  %s349_s2 = inlined_call_operand.vmem [shape: bf16[64,32], index: 2, kind: input, shape index: {}]   ;;  %s350_s3 = inlined_call_operand.hbm [shape: f32[16,32], index: 3, kind: output, shape index: {}]  }
   0x1   :  { %v245_v0 = vld [vmem:[%s348_s1] sm:$0xff]   ;;  %220 = vmatprep.subr.bf16.mxu0 %v279_v1  ;;  %v246_v2 = vld [vmem:[%s348_s1 + $0x8] sm:$0xff]   ;;  %228 = vmatprep.subr.bf16.mxu1 %v279_v1  ;;  %21 = vst.msk [vmem:[#allocation2] sm:$0xff] %vm20_vm1, %v279_v1  ;;  %22 = vst.msk [vmem:[#allocation2 + $0x8] sm:$0xff] %vm20_vm1, %v279_v1 }
   0x2   :  { %221 = vmatpush3.bf16.msra.mxu0 %v245_v0  ;;  %224 = vmatprep.mubr.msk.bf16.mxu0 %vm280_vm0, %v279_v1  ;;  %v23_v3 = vld [vmem:[%s347_s0] sm:$0xff]  ;;  %v24_v4 = vld [vmem:[%s347_s0 + $0x8] sm:$0xff] }
   0x3   :  { %222 = vmatprep.subr.bf16.mxu0 %v279_v1  ;;  %236 = vmatprep.mubr.msk.bf16.mxu1 %vm280_vm0, %v279_v1  ;;  %v25_v5 = vpack.c.bf16 %v24_v4, %v23_v3 }
   0x4   :  { %8 = vsyncpa [#allocation4], 0  ;;  %v247_v6 = vld [vmem:[%s349_s2] sm:$0xff]   ;;  %v248_v7 = vld [vmem:[%s349_s2 + $0x8] sm:$0xff]   ;;  %vm132_vm2 = vcmask 523264  }
   0x5   :  { %229 = vmatpush3.bf16.msra.mxu1 %v247_v6  ;;  %v249_v8 = vld [vmem:[%s349_s2 + $0x10] sm:$0xff]   ;;  %v250_v9 = vld [vmem:[%s349_s2 + $0x18] sm:$0xff]   ;;  %s281_s2 = smov [#allocation3]  }
   0x6   :  { %223 = vmatpush3.bf16.msra.mxu0 %v246_v2  ;;  %230 = vmatprep.subr.bf16.mxu1 %v279_v1  ;;  %s193_s26 = sshll.u32 %s281_s2, 4  ;;  %s194_s26 = int_to_ptr.vmem [resolvable:$true] %s193_s26 }
   0x7   :  { %s255_s27 = scalar_lea.vmem %s194_s26, 256  ;;  %p260_p1 = scmp.lt.s32.totalorder %s194_s26, %s194_s26 }
   0x8   :  { %v97_v25 = vld [vmem:[#allocation2] sm:$0xff]  ;;  %v98_v27 = vld [vmem:[#allocation2 + $0x8] sm:$0xff]  ;;  %p256_p0 = scmp.ne.s32.totalorder %s194_s26, %s255_s27  ;;  %p261_p2 = scmp.lt.s32.totalorder %s255_s27, %s255_s27 }
   0x9   :  { %225 = vmatmul.mubr.msk.bf16.vlgmr.msra.gmra.mrb[0].mxu0 %vm20_vm1, %v25_v5  ;;  %231 = vmatpush3.bf16.msra.mxu1 %v248_v7 }
   0xa   :  { %232 = vmatprep.subr.bf16.mxu1 %v279_v1  ;;  %p262_p3 = por %p261_p2, %p260_p1 }
   0xc   :  { %p263_p4 = pnand %p262_p3, %p256_p0 }
   0xd   :  { %233 = vmatpush3.bf16.msra.mxu1 %v249_v8 }
   0xe   :  { %234 = vmatprep.subr.bf16.mxu1 %v279_v1 }
  0x11   :  { %235 = vmatpush3.bf16.msra.mxu1 %v250_v9 }
  0xdc   :  { %v80_v10 = vpop.f32.mrb[0].mxu0 }
  0xdd   :  { %v89_v11 = vmul.f32 0.70710677, %v80_v10  ;;  %v226_v12 = vpop.f32.mrb[1].mxu0  ;;  %v87_v19 = vmul.f32 0.5, %v80_v10 }
  0xde   :  { %v83_v13 = vpop.f32.mrb[2].mxu0 }
  0xdf   :  { %251 = verf.f32 %v89_v11  ;;  %v90_v14 = vmul.f32 0.70710677, %v83_v13  ;;  %v227_v15 = vpop.f32.mrb[3].mxu0  ;;  %v88_v20 = vmul.f32 0.5, %v83_v13 }
  0xe1   :  { %253 = verf.f32 %v90_v14 }
  0xe9   :  { %v252_v16 = vpop.eup %251 }
  0xea   :  { %v93_v17 = vadd.f32 1.0, %v252_v16 }
  0xeb   :  { %v254_v18 = vpop.eup %253 }
  0xec   :  { %v94_v21 = vadd.f32 1.0, %v254_v18  ;;  %v95_v22 = vmul.f32 %v93_v17, %v87_v19 }
  0xee   :  { %v96_v23 = vmul.f32 %v94_v21, %v88_v20 }
  0xf0   :  { %v99_v24 = vpack.c.bf16 %v96_v23, %v95_v22 }
  0xf2   :  { %237 = vmatmul.mubr.msk.bf16.vlgmr.msra.gmra.mrb[0].mxu1 %vm132_vm2, %v99_v24 }
 0x1c5   :  { %v170_v26 = vpop.f32.mrb[0].mxu1 }
 0x1c6   :  { %v177_v28 = vadd.f32 %v170_v26, %v97_v25  ;;  %v238_v29 = vpop.f32.mrb[1].mxu1 }
 0x1c7   :  { %v173_v30 = vpop.f32.mrb[2].mxu1 }
 0x1c8   :  { %179 = vst.msk [vmem:[#allocation2] sm:$0xff] %vm20_vm1, %v177_v28  ;;  %v178_v31 = vadd.f32 %v173_v30, %v98_v27  ;;  %v239_v32 = vpop.f32.mrb[3].mxu1 }
 0x1ca   :  { %180 = vst.msk [vmem:[#allocation2 + $0x8] sm:$0xff] %vm20_vm1, %v178_v31 }
 0x1cf   :  { %v184_v33 = vld [vmem:[#allocation2] sm:$0xff] }
 0x1d0   :  { %186 = vst.msk [vmem:[#allocation3] sm:$0xff] %vm20_vm1, %v184_v33 }
 0x1d1   :  { %v185_v34 = vld [vmem:[#allocation2 + $0x8] sm:$0xff] }
 0x1d2   :  { %187 = vst.msk [vmem:[#allocation3 + $0x8] sm:$0xff] %vm20_vm1, %v185_v34 }
 0x1d3   :  { %266 = shalt.err (!%p263_p4)
}
 0x1d4   :  { %s267_s30 = scalar_lea.hbm %s350_s3, 256 }
 0x1d5   :  { %p268_p5 = scmp.ne.s32.totalorder %s350_s3, %s267_s30  ;;  %p271_p6 = scmp.lt.u32.totalorder %s267_s30, %s350_s3 }
 0x1d7   :  { %p273_p7 = pnand %p271_p6, %p268_p5 }
 0x1d9   :  { %276 = shalt.err (!%p273_p7)
}
 0x1da   :  { %s282_s8 = smov 128   ;;  %s283_s9 = smov 8  }
 0x1db   :  { %199 = dma.vmem_to_hbm [thread:$0]  %s194_s26, 256, %s350_s3, [#allocation4], %s282_s8, %s282_s8, %s283_s9  }
 0x1dc   :  { %277 = dma.done.wait [#allocation4], 256  }
 0x1dd   :  { %278 = vsyncadd [#allocation4], 4294967040 }
 0x1de   :  { %203 = vsyncpa [#allocation4], 1 }

</bundles_post_ra>
